<compile_context>
chip_gen: v5e
topology: v5e:2x2
jax: 0.10.0
libtpu: 0.0.40
codegen_flags: <defaults>
</compile_context>

<pallas_src>
import functools

import jax
import jax.numpy as jnp
from jax import lax
from jax.experimental import pallas as pl
from jax.experimental.pallas import tpu as pltpu


def _round_up(x, m):
    return ((x + m - 1) // m) * m


def _santa_fe_kernel(x_ref, w_ih_ref, w_hh_ref, b_ref,
                     w_h1_ref, b_h1_ref, w_h2_ref, b_h2_ref,
                     q_ref, xw_sc, h_sc, c_sc, *, T, CHUNK, TB, D, H, O):
    """One (batch_tile, time_chunk) grid step.

    x_ref:     (CHUNK, TB, D)  input slab for this chunk (zero padded past T).
    q_ref:     (TB, 128)       padded dueling-head output (written on last chunk).
    xw_sc:     (CHUNK, TB, 4H) per-chunk input-projection scratch.
    h_sc/c_sc: (TB, 4H)        persistent recurrent state (valid lanes [0, H)).
    """
    G = 4 * H
    tci = pl.program_id(1)
    n_tc = pl.num_programs(1)

    # ---- Init recurrent state at the first time chunk of this batch tile ----
    @pl.when(tci == 0)
    def _():
        h_sc[...] = jnp.zeros_like(h_sc)
        c_sc[...] = jnp.zeros_like(c_sc)

    # ---- Phase 1: hoisted input projection for the whole chunk ---------------
    x2d = x_ref[...].reshape(CHUNK * TB, D)
    xw = jnp.dot(x2d, w_ih_ref[...], preferred_element_type=jnp.float32)
    xw_sc[...] = (xw + b_ref[...]).reshape(CHUNK, TB, G)

    # ---- Phase 2: serial recurrence over this chunk ---------------------------
    w_hh = w_hh_ref[...]                     # (4H, 4H); rows [H:) are zero.
    chunk_start = tci * CHUNK

    def step(t, carry):
        h, c = carry                          # (TB, 4H) full-width carries.
        gates = xw_sc[t] + jnp.dot(h, w_hh, preferred_element_type=jnp.float32)
        # Full-width transcendentals (one vreg each).  Gate blocks: i | f | g | o
        # live in lanes [0,H) [H,2H) [2H,3H) [3H,4H).
        sig = 0.5 * jnp.tanh(0.5 * gates) + 0.5     # sigmoid via a single tanh
        th = jnp.tanh(gates)
        # Align f / g / o into lanes [0, H) with XLU rotates (i already there).
        f_al = pltpu.roll(sig, 3 * H, axis=1)
        g_al = pltpu.roll(th, 2 * H, axis=1)
        o_al = pltpu.roll(sig, 1 * H, axis=1)
        c_new = f_al * c + sig * g_al               # valid in lanes [0, H)
        h_new = o_al * jnp.tanh(c_new)
        # Padded steps past the true sequence length leave the state untouched.
        valid = (chunk_start + t) < T
        return jnp.where(valid, h_new, h), jnp.where(valid, c_new, c)

    h, c = lax.fori_loop(0, CHUNK, step, (h_sc[...], c_sc[...]), unroll=True)
    h_sc[...] = h
    c_sc[...] = c

    # ---- Phase 3: fused dueling heads on the final hidden state ---------------
    @pl.when(tci == n_tc - 1)
    def _():
        # Level 1: [fc_value | fc_advantage]; rows [H:) of w_h1 are zero so the
        # garbage lanes of the full-width h contribute nothing.
        hid = jnp.maximum(
            jnp.dot(h, w_h1_ref[...], preferred_element_type=jnp.float32)
            + b_h1_ref[...], 0.0)                            # (TB, 2F)
        # Level 2: block-diagonal -> col 0 = value, cols [1, 1+O) = advantage.
        out2 = (jnp.dot(hid, w_h2_ref[...], preferred_element_type=jnp.float32)
                + b_h2_ref[...])                             # (TB, 128)
        value = out2[:, 0:1]
        col = lax.broadcasted_iota(jnp.int32, out2.shape, 1)
        adv_mask = jnp.logical_and(col >= 1, col < 1 + O)
        adv_sum = jnp.sum(jnp.where(adv_mask, out2, 0.0), axis=1, keepdims=True)
        mean_adv = adv_sum * (1.0 / O)
        # Columns [1, 1+O) now hold q = value + advantage - mean(advantage).
        q_ref[...] = out2 + (value - mean_adv)


def prepare_kernel_params(params):
    """Build the fused / zero-padded kernel-layout weights ONCE (not per call)."""
    f32 = jnp.float32
    H = params["w_hh_t"].shape[0]
    F = params["wv1_t"].shape[1]
    O = params["wa2_t"].shape[1]
    G = 4 * H
    P = 128
    assert 1 + O <= P, "output_size + 1 must fit in 128 lanes"

    # Recurrent weight padded to (4H, 4H): rows [H:) zero so the full-width h
    # carry (garbage lanes) never contributes.
    w_hh_pad = jnp.zeros((G, G), f32).at[:H, :].set(params["w_hh_t"])

    # Fused first-level head [fc_value | fc_advantage], rows [H:) zero.
    w_h1 = (jnp.zeros((G, 2 * F), f32)
            .at[:H, :F].set(params["wv1_t"])
            .at[:H, F:].set(params["wa1_t"]))
    b_h1 = jnp.concatenate([params["bv1"], params["ba1"]], axis=1)

    # Fused second-level head, block-diagonal into a lane-dense 128-wide output.
    w_h2 = (jnp.zeros((2 * F, P), f32)
            .at[:F, 0:1].set(params["wv2_t"])
            .at[F:, 1:1 + O].set(params["wa2_t"]))
    b_h2 = (jnp.zeros((1, P), f32)
            .at[0, 0].set(params["bv2"][0, 0])
            .at[0, 1:1 + O].set(params["ba2"][0]))

    return {
        "w_ih_t": params["w_ih_t"].astype(f32),
        "w_hh_pad": w_hh_pad,
        "b": params["b"].astype(f32),
        "w_h1": w_h1, "b_h1": b_h1, "w_h2": w_h2, "b_h2": b_h2,
    }


def _vmem_bytes(chunk, tb, d, h, f, p=128, itemsize=4):
    """Rough VMEM footprint (tile-padded), for chunk sizing / vmem_limit_bytes."""
    g = 4 * h

    def tile(r, c):
        return _round_up(r, 8) * _round_up(c, 128) * itemsize

    est = 0
    est += 2 * chunk * tile(tb, d)                         # x block, double-buffered
    est += chunk * tile(tb, g)                             # xw scratch
    est += 2 * tile(tb, g)                                 # h / c scratch
    est += tile(d, g) + tile(g, g) + tile(1, g)            # LSTM weights
    est += tile(g, 2 * f) + tile(1, 2 * f)                 # head level 1
    est += tile(2 * f, p) + tile(1, p)                     # head level 2
    est += 2 * tile(tb, p)                                 # output block
    return est


@functools.partial(jax.jit, static_argnames=("output_size", "t_chunk"))
def santa_fe_lstm_forward(x, kparams, output_size, t_chunk=16):
    """x: (B, T, D) float32 -> q_values: (B, output_size) float32."""
    B, T, D = x.shape
    G = kparams["w_hh_pad"].shape[0]
    H = G // 4
    F = kparams["w_h1"].shape[1] // 2
    O = output_size
    P = 128

    # Batch tiling: 2 "parallel" tiles when the batch is big enough (v7x has
    # two TensorCores); a single sublane-padded tile otherwise.
    if B <= 8:
        n_btiles, TB = 1, 8
    else:
        n_btiles = 2
        TB = _round_up((B + 1) // 2, 8)
    B_pad = n_btiles * TB

    # Time chunking: bounded VMEM + pipelined x DMA.  Keep the working set
    # under ~24 MiB so it also fits v7x (64 MiB VMEM) and v5e's 16 MiB scoped
    # default without relying on raising limits too far.
    CHUNK = max(1, min(t_chunk, T))
    while CHUNK > 1 and _vmem_bytes(CHUNK, TB, D, H, F) > 24 * 1024 * 1024:
        CHUNK = max(1, CHUNK // 2)
    n_tchunks = (T + CHUNK - 1) // CHUNK
    T_pad = n_tchunks * CHUNK

    # Time-major, time/batch padded input layout (padding masked in-kernel).
    x_tbd = jnp.transpose(x, (1, 0, 2))                    # (T, B, D)
    x_tbd = jnp.pad(x_tbd, ((0, T_pad - T), (0, B_pad - B), (0, 0)))

    vmem_limit = int(min(max(2 * _vmem_bytes(CHUNK, TB, D, H, F), 8 << 20),
                         96 << 20))

    kernel = functools.partial(_santa_fe_kernel, T=T, CHUNK=CHUNK, TB=TB,
                               D=D, H=H, O=O)

    grid_spec = pltpu.PrefetchScalarGridSpec(
        num_scalar_prefetch=0,
        grid=(n_btiles, n_tchunks),
        in_specs=[
            pl.BlockSpec((CHUNK, TB, D), lambda bi, ti: (ti, bi, 0)),   # x chunk
            pl.BlockSpec((D, G), lambda bi, ti: (0, 0)),                # W_ih
            pl.BlockSpec((G, G), lambda bi, ti: (0, 0)),                # W_hh_pad
            pl.BlockSpec((1, G), lambda bi, ti: (0, 0)),                # bias
            pl.BlockSpec((G, 2 * F), lambda bi, ti: (0, 0)),            # head 1 W
            pl.BlockSpec((1, 2 * F), lambda bi, ti: (0, 0)),            # head 1 b
            pl.BlockSpec((2 * F, P), lambda bi, ti: (0, 0)),            # head 2 W
            pl.BlockSpec((1, P), lambda bi, ti: (0, 0)),                # head 2 b
        ],
        out_specs=pl.BlockSpec((TB, P), lambda bi, ti: (bi, 0)),
        scratch_shapes=[
            pltpu.VMEM((CHUNK, TB, G), jnp.float32),   # per-chunk xw projection
            pltpu.VMEM((TB, G), jnp.float32),          # h carry (persistent)
            pltpu.VMEM((TB, G), jnp.float32),          # c carry (persistent)
        ],
    )

    q_full = pl.pallas_call(
        kernel,
        out_shape=jax.ShapeDtypeStruct((B_pad, P), jnp.float32),
        grid_spec=grid_spec,
        compiler_params=pltpu.CompilerParams(
            dimension_semantics=("parallel", "arbitrary"),
            vmem_limit_bytes=vmem_limit,
        ),
    )(x_tbd, kparams["w_ih_t"], kparams["w_hh_pad"], kparams["b"],
      kparams["w_h1"], kparams["b_h1"], kparams["w_h2"], kparams["b_h2"])

    return q_full[:B, 1:1 + O]


def init_params(key, input_size, hidden_size, output_size, feat=128):
    ks = jax.random.split(key, 11)
    s = 0.1
    f32 = jnp.float32
    return {
        # LSTM weights stored pre-transposed: (D, 4H), (H, 4H); gate order i,f,g,o.
        "w_ih_t": (s * jax.random.normal(ks[0], (input_size, 4 * hidden_size))).astype(f32),
        "w_hh_t": (s * jax.random.normal(ks[1], (hidden_size, 4 * hidden_size))).astype(f32),
        "b":      (s * jax.random.normal(ks[2], (1, 4 * hidden_size))).astype(f32),
        "wv1_t":  (s * jax.random.normal(ks[3], (hidden_size, feat))).astype(f32),
        "bv1":    (s * jax.random.normal(ks[4], (1, feat))).astype(f32),
        "wa1_t":  (s * jax.random.normal(ks[5], (hidden_size, feat))).astype(f32),
        "ba1":    (s * jax.random.normal(ks[6], (1, feat))).astype(f32),
        "wv2_t":  (s * jax.random.normal(ks[7], (feat, 1))).astype(f32),
        "bv2":    (s * jax.random.normal(ks[8], (1, 1))).astype(f32),
        "wa2_t":  (s * jax.random.normal(ks[9], (feat, output_size))).astype(f32),
        "ba2":    (s * jax.random.normal(ks[10], (1, output_size))).astype(f32),
    }


def reference_forward(x, p):
    """Pure-JAX reference matching torch semantics (gate order i,f,g,o)."""
    B, T, D = x.shape
    H = p["w_hh_t"].shape[0]
    h = jnp.zeros((B, H), jnp.float32)
    c = jnp.zeros((B, H), jnp.float32)
    for t in range(T):
        gates = x[:, t, :] @ p["w_ih_t"] + h @ p["w_hh_t"] + p["b"]
        i = jax.nn.sigmoid(gates[:, 0:H])
        f = jax.nn.sigmoid(gates[:, H:2 * H])
        g = jnp.tanh(gates[:, 2 * H:3 * H])
        o = jax.nn.sigmoid(gates[:, 3 * H:4 * H])
        c = f * c + i * g
        h = o * jnp.tanh(c)
    v = jnp.maximum(h @ p["wv1_t"] + p["bv1"], 0.0)
    a = jnp.maximum(h @ p["wa1_t"] + p["ba1"], 0.0)
    value = v @ p["wv2_t"] + p["bv2"]
    adv = a @ p["wa2_t"] + p["ba2"]
    return value + (adv - jnp.mean(adv, axis=1, keepdims=True))


if __name__ == "__main__":
    INPUT_SIZE, HIDDEN_SIZE, OUTPUT_SIZE = 8, 32, 4
    B, T = 2, 8

    key = jax.random.PRNGKey(0)
    k_x, k_p = jax.random.split(key)
    x = jax.random.normal(k_x, (B, T, INPUT_SIZE), dtype=jnp.float32)
    params = init_params(k_p, INPUT_SIZE, HIDDEN_SIZE, OUTPUT_SIZE)

    # Kernel-layout weights are built once, outside the per-call forward.
    kparams = prepare_kernel_params(params)
    kparams = {k: jax.block_until_ready(v) for k, v in kparams.items()}

    # t_chunk=4 -> two time chunks: exercises the VMEM-carried h/c across the
    # "arbitrary" time-chunk grid axis.
    q = santa_fe_lstm_forward(x, kparams, output_size=OUTPUT_SIZE, t_chunk=4)
    q = jax.block_until_ready(q)

    q_ref = reference_forward(x, params)
    assert q.shape == (B, OUTPUT_SIZE)
    assert jnp.allclose(q, q_ref, atol=1e-4, rtol=1e-4), "mismatch vs reference"

    print("KERNEL_OK")
</pallas_src>

<mosaic_0001>
module attributes {stable_mosaic.version = 11 : i64} {
  func.func @_santa_fe_kernel(%arg0: i32, %arg1: i32, %arg2: memref<4x8x8xf32, #tpu.memory_space<vmem>>, %arg3: memref<8x128xf32, #tpu.memory_space<vmem>>, %arg4: memref<128x128xf32, #tpu.memory_space<vmem>>, %arg5: memref<1x128xf32, #tpu.memory_space<vmem>>, %arg6: memref<128x256xf32, #tpu.memory_space<vmem>>, %arg7: memref<1x256xf32, #tpu.memory_space<vmem>>, %arg8: memref<256x128xf32, #tpu.memory_space<vmem>>, %arg9: memref<1x128xf32, #tpu.memory_space<vmem>>, %arg10: memref<8x128xf32, #tpu.memory_space<vmem>>, %arg11: memref<4x8x128xf32, #tpu.memory_space<vmem>>, %arg12: memref<8x128xf32, #tpu.memory_space<vmem>>, %arg13: memref<8x128xf32, #tpu.memory_space<vmem>>) attributes {dimension_semantics = [#tpu.dimension_semantics<parallel>, #tpu.dimension_semantics<arbitrary>], iteration_bounds = array<i64: 1, 2>, scalar_prefetch = 0 : i64, scratch_operands = 3 : i64, tpu.core_type = #tpu.core_type<tc>, window_params = [{transform_indices = @transform_0, window_bounds = array<i64: 4, 8, 8>}, {pipeline_mode = #tpu.pipeline_mode<synchronous>, transform_indices = @transform_1, window_bounds = array<i64: 8, 128>}, {pipeline_mode = #tpu.pipeline_mode<synchronous>, transform_indices = @transform_2, window_bounds = array<i64: 128, 128>}, {pipeline_mode = #tpu.pipeline_mode<synchronous>, transform_indices = @transform_3, window_bounds = array<i64: 1, 128>}, {pipeline_mode = #tpu.pipeline_mode<synchronous>, transform_indices = @transform_4, window_bounds = array<i64: 128, 256>}, {pipeline_mode = #tpu.pipeline_mode<synchronous>, transform_indices = @transform_5, window_bounds = array<i64: 1, 256>}, {pipeline_mode = #tpu.pipeline_mode<synchronous>, transform_indices = @transform_6, window_bounds = array<i64: 256, 128>}, {pipeline_mode = #tpu.pipeline_mode<synchronous>, transform_indices = @transform_7, window_bounds = array<i64: 1, 128>}, {transform_indices = @transform_8, window_bounds = array<i64: 8, 128>}]} {
    %c0_i32 = arith.constant 0 : i32
    %0 = arith.cmpi eq, %arg1, %c0_i32 : i32
    %1 = arith.extui %0 : i1 to i32
    %c0_i32_0 = arith.constant 0 : i32
    %2 = arith.cmpi ne, %1, %c0_i32_0 : i32
    scf.if %2 {
      %cst_60 = arith.constant 0.000000e+00 : f32
      %121 = vector.broadcast %cst_60 : f32 to vector<8x128xf32>
      %c0_61 = arith.constant 0 : index
      %c0_62 = arith.constant 0 : index
      %122 = vector.load %arg12[%c0_61, %c0_62] : memref<8x128xf32, #tpu.memory_space<vmem>>, vector<8x128xf32>
      tpu.vector_store %arg12[%c0_61, %c0_62], %121 {strides = array<i32>} : memref<8x128xf32, #tpu.memory_space<vmem>>, vector<8x128xf32>,
      %cst_63 = arith.constant 0.000000e+00 : f32
      %123 = vector.broadcast %cst_63 : f32 to vector<8x128xf32>
      %c0_64 = arith.constant 0 : index
      %c0_65 = arith.constant 0 : index
      %124 = vector.load %arg13[%c0_64, %c0_65] : memref<8x128xf32, #tpu.memory_space<vmem>>, vector<8x128xf32>
      tpu.vector_store %arg13[%c0_64, %c0_65], %123 {strides = array<i32>} : memref<8x128xf32, #tpu.memory_space<vmem>>, vector<8x128xf32>,
    } else {
    }
    %c0 = arith.constant 0 : index
    %c0_1 = arith.constant 0 : index
    %c0_2 = arith.constant 0 : index
    %3 = vector.load %arg2[%c0, %c0_1, %c0_2] : memref<4x8x8xf32, #tpu.memory_space<vmem>>, vector<4x8x8xf32>
    %4 = vector.shape_cast %3 : vector<4x8x8xf32> to vector<32x8xf32>
    %c0_3 = arith.constant 0 : index
    %c0_4 = arith.constant 0 : index
    %5 = vector.load %arg3[%c0_3, %c0_4] : memref<8x128xf32, #tpu.memory_space<vmem>>, vector<8x128xf32>
    %cst = arith.constant dense<0.000000e+00> : vector<32x128xf32>
    %6 = tpu.matmul %4, %5, %cst {dimension_numbers = #tpu.dot_dimension_numbers<[1], [0], [0], [1], [0, 0, 1, 1], [], []>} : vector<32x8xf32>, vector<8x128xf32>, vector<32x128xf32> -> vector<32x128xf32>
    %c0_5 = arith.constant 0 : index
    %c0_6 = arith.constant 0 : index
    %7 = vector.load %arg5[%c0_5, %c0_6] : memref<1x128xf32, #tpu.memory_space<vmem>>, vector<1x128xf32>
    %8 = vector.broadcast %7 : vector<1x128xf32> to vector<32x128xf32>
    %9 = arith.addf %6, %8 : vector<32x128xf32>
    %10 = vector.shape_cast %9 : vector<32x128xf32> to vector<4x8x128xf32>
    %c0_7 = arith.constant 0 : index
    %c0_8 = arith.constant 0 : index
    %c0_9 = arith.constant 0 : index
    %11 = vector.load %arg11[%c0_7, %c0_8, %c0_9] : memref<4x8x128xf32, #tpu.memory_space<vmem>>, vector<4x8x128xf32>
    tpu.vector_store %arg11[%c0_7, %c0_8, %c0_9], %10 {strides = array<i32>} : memref<4x8x128xf32, #tpu.memory_space<vmem>>, vector<4x8x128xf32>,
    %c0_10 = arith.constant 0 : index
    %c0_11 = arith.constant 0 : index
    %12 = vector.load %arg4[%c0_10, %c0_11] : memref<128x128xf32, #tpu.memory_space<vmem>>, vector<128x128xf32>
    %c4_i32 = arith.constant 4 : i32
    %13 = arith.muli %arg1, %c4_i32 : i32
    %c0_12 = arith.constant 0 : index
    %c0_13 = arith.constant 0 : index
    %14 = vector.load %arg12[%c0_12, %c0_13] : memref<8x128xf32, #tpu.memory_space<vmem>>, vector<8x128xf32>
    %c0_14 = arith.constant 0 : index
    %c0_15 = arith.constant 0 : index
    %15 = vector.load %arg13[%c0_14, %c0_15] : memref<8x128xf32, #tpu.memory_space<vmem>>, vector<8x128xf32>
    %c0_i32_16 = arith.constant 0 : i32
    %16 = arith.index_cast %c0_i32_16 : i32 to index
    %c0_17 = arith.constant 0 : index
    %c0_18 = arith.constant 0 : index
    %17 = vector.load %arg11[%16, %c0_17, %c0_18] : memref<4x8x128xf32, #tpu.memory_space<vmem>>, vector<1x8x128xf32>
    %18 = vector.shape_cast %17 : vector<1x8x128xf32> to vector<8x128xf32>
    %cst_19 = arith.constant dense<0.000000e+00> : vector<8x128xf32>
    %19 = tpu.matmul %14, %12, %cst_19 {dimension_numbers = #tpu.dot_dimension_numbers<[1], [0], [0], [1], [0, 0, 1, 1], [], []>} : vector<8x128xf32>, vector<128x128xf32>, vector<8x128xf32> -> vector<8x128xf32>
    %20 = arith.addf %18, %19 : vector<8x128xf32>
    %cst_20 = arith.constant 5.000000e-01 : f32
    %21 = vector.broadcast %cst_20 : f32 to vector<8x128xf32>
    %22 = arith.mulf %21, %20 : vector<8x128xf32>
    %23 = math.tanh %22 : vector<8x128xf32>
    %cst_21 = arith.constant 5.000000e-01 : f32
    %24 = vector.broadcast %cst_21 : f32 to vector<8x128xf32>
    %25 = arith.mulf %24, %23 : vector<8x128xf32>
    %cst_22 = arith.constant 5.000000e-01 : f32
    %26 = vector.broadcast %cst_22 : f32 to vector<8x128xf32>
    %27 = arith.addf %25, %26 : vector<8x128xf32>
    %28 = math.tanh %20 : vector<8x128xf32>
    %c96_i32 = arith.constant 96 : i32
    %29 = tpu.dynamic_rotate %27 by %c96_i32 dim 1 : vector<8x128xf32>, i32 -> vector<8x128xf32>
    %c64_i32 = arith.constant 64 : i32
    %30 = tpu.dynamic_rotate %28 by %c64_i32 dim 1 : vector<8x128xf32>, i32 -> vector<8x128xf32>
    %c32_i32 = arith.constant 32 : i32
    %31 = tpu.dynamic_rotate %27 by %c32_i32 dim 1 : vector<8x128xf32>, i32 -> vector<8x128xf32>
    %32 = arith.mulf %29, %15 : vector<8x128xf32>
    %33 = arith.mulf %27, %30 : vector<8x128xf32>
    %34 = arith.addf %32, %33 : vector<8x128xf32>
    %35 = math.tanh %34 : vector<8x128xf32>
    %36 = arith.mulf %31, %35 : vector<8x128xf32>
    %37 = arith.addi %13, %c0_i32_16 : i32
    %c8_i32 = arith.constant 8 : i32
    %38 = arith.cmpi slt, %37, %c8_i32 : i32
    %39 = arith.select %38, %36, %14 : vector<8x128xf32>
    %40 = arith.select %38, %34, %15 : vector<8x128xf32>
    %c1_i32 = arith.constant 1 : i32
    %41 = arith.index_cast %c1_i32 : i32 to index
    %c0_23 = arith.constant 0 : index
    %c0_24 = arith.constant 0 : index
    %42 = vector.load %arg11[%41, %c0_23, %c0_24] : memref<4x8x128xf32, #tpu.memory_space<vmem>>, vector<1x8x128xf32>
    %43 = vector.shape_cast %42 : vector<1x8x128xf32> to vector<8x128xf32>
    %cst_25 = arith.constant dense<0.000000e+00> : vector<8x128xf32>
    %44 = tpu.matmul %39, %12, %cst_25 {dimension_numbers = #tpu.dot_dimension_numbers<[1], [0], [0], [1], [0, 0, 1, 1], [], []>} : vector<8x128xf32>, vector<128x128xf32>, vector<8x128xf32> -> vector<8x128xf32>
    %45 = arith.addf %43, %44 : vector<8x128xf32>
    %cst_26 = arith.constant 5.000000e-01 : f32
    %46 = vector.broadcast %cst_26 : f32 to vector<8x128xf32>
    %47 = arith.mulf %46, %45 : vector<8x128xf32>
    %48 = math.tanh %47 : vector<8x128xf32>
    %cst_27 = arith.constant 5.000000e-01 : f32
    %49 = vector.broadcast %cst_27 : f32 to vector<8x128xf32>
    %50 = arith.mulf %49, %48 : vector<8x128xf32>
    %cst_28 = arith.constant 5.000000e-01 : f32
    %51 = vector.broadcast %cst_28 : f32 to vector<8x128xf32>
    %52 = arith.addf %50, %51 : vector<8x128xf32>
    %53 = math.tanh %45 : vector<8x128xf32>
    %c96_i32_29 = arith.constant 96 : i32
    %54 = tpu.dynamic_rotate %52 by %c96_i32_29 dim 1 : vector<8x128xf32>, i32 -> vector<8x128xf32>
    %c64_i32_30 = arith.constant 64 : i32
    %55 = tpu.dynamic_rotate %53 by %c64_i32_30 dim 1 : vector<8x128xf32>, i32 -> vector<8x128xf32>
    %c32_i32_31 = arith.constant 32 : i32
    %56 = tpu.dynamic_rotate %52 by %c32_i32_31 dim 1 : vector<8x128xf32>, i32 -> vector<8x128xf32>
    %57 = arith.mulf %54, %40 : vector<8x128xf32>
    %58 = arith.mulf %52, %55 : vector<8x128xf32>
    %59 = arith.addf %57, %58 : vector<8x128xf32>
    %60 = math.tanh %59 : vector<8x128xf32>
    %61 = arith.mulf %56, %60 : vector<8x128xf32>
    %62 = arith.addi %13, %c1_i32 : i32
    %c8_i32_32 = arith.constant 8 : i32
    %63 = arith.cmpi slt, %62, %c8_i32_32 : i32
    %64 = arith.select %63, %61, %39 : vector<8x128xf32>
    %65 = arith.select %63, %59, %40 : vector<8x128xf32>
    %c2_i32 = arith.constant 2 : i32
    %66 = arith.index_cast %c2_i32 : i32 to index
    %c0_33 = arith.constant 0 : index
    %c0_34 = arith.constant 0 : index
    %67 = vector.load %arg11[%66, %c0_33, %c0_34] : memref<4x8x128xf32, #tpu.memory_space<vmem>>, vector<1x8x128xf32>
    %68 = vector.shape_cast %67 : vector<1x8x128xf32> to vector<8x128xf32>
    %cst_35 = arith.constant dense<0.000000e+00> : vector<8x128xf32>
    %69 = tpu.matmul %64, %12, %cst_35 {dimension_numbers = #tpu.dot_dimension_numbers<[1], [0], [0], [1], [0, 0, 1, 1], [], []>} : vector<8x128xf32>, vector<128x128xf32>, vector<8x128xf32> -> vector<8x128xf32>
    %70 = arith.addf %68, %69 : vector<8x128xf32>
    %cst_36 = arith.constant 5.000000e-01 : f32
    %71 = vector.broadcast %cst_36 : f32 to vector<8x128xf32>
    %72 = arith.mulf %71, %70 : vector<8x128xf32>
    %73 = math.tanh %72 : vector<8x128xf32>
    %cst_37 = arith.constant 5.000000e-01 : f32
    %74 = vector.broadcast %cst_37 : f32 to vector<8x128xf32>
    %75 = arith.mulf %74, %73 : vector<8x128xf32>
    %cst_38 = arith.constant 5.000000e-01 : f32
    %76 = vector.broadcast %cst_38 : f32 to vector<8x128xf32>
    %77 = arith.addf %75, %76 : vector<8x128xf32>
    %78 = math.tanh %70 : vector<8x128xf32>
    %c96_i32_39 = arith.constant 96 : i32
    %79 = tpu.dynamic_rotate %77 by %c96_i32_39 dim 1 : vector<8x128xf32>, i32 -> vector<8x128xf32>
    %c64_i32_40 = arith.constant 64 : i32
    %80 = tpu.dynamic_rotate %78 by %c64_i32_40 dim 1 : vector<8x128xf32>, i32 -> vector<8x128xf32>
    %c32_i32_41 = arith.constant 32 : i32
    %81 = tpu.dynamic_rotate %77 by %c32_i32_41 dim 1 : vector<8x128xf32>, i32 -> vector<8x128xf32>
    %82 = arith.mulf %79, %65 : vector<8x128xf32>
    %83 = arith.mulf %77, %80 : vector<8x128xf32>
    %84 = arith.addf %82, %83 : vector<8x128xf32>
    %85 = math.tanh %84 : vector<8x128xf32>
    %86 = arith.mulf %81, %85 : vector<8x128xf32>
    %87 = arith.addi %13, %c2_i32 : i32
    %c8_i32_42 = arith.constant 8 : i32
    %88 = arith.cmpi slt, %87, %c8_i32_42 : i32
    %89 = arith.select %88, %86, %64 : vector<8x128xf32>
    %90 = arith.select %88, %84, %65 : vector<8x128xf32>
    %c3_i32 = arith.constant 3 : i32
    %91 = arith.index_cast %c3_i32 : i32 to index
    %c0_43 = arith.constant 0 : index
    %c0_44 = arith.constant 0 : index
    %92 = vector.load %arg11[%91, %c0_43, %c0_44] : memref<4x8x128xf32, #tpu.memory_space<vmem>>, vector<1x8x128xf32>
    %93 = vector.shape_cast %92 : vector<1x8x128xf32> to vector<8x128xf32>
    %cst_45 = arith.constant dense<0.000000e+00> : vector<8x128xf32>
    %94 = tpu.matmul %89, %12, %cst_45 {dimension_numbers = #tpu.dot_dimension_numbers<[1], [0], [0], [1], [0, 0, 1, 1], [], []>} : vector<8x128xf32>, vector<128x128xf32>, vector<8x128xf32> -> vector<8x128xf32>
    %95 = arith.addf %93, %94 : vector<8x128xf32>
    %cst_46 = arith.constant 5.000000e-01 : f32
    %96 = vector.broadcast %cst_46 : f32 to vector<8x128xf32>
    %97 = arith.mulf %96, %95 : vector<8x128xf32>
    %98 = math.tanh %97 : vector<8x128xf32>
    %cst_47 = arith.constant 5.000000e-01 : f32
    %99 = vector.broadcast %cst_47 : f32 to vector<8x128xf32>
    %100 = arith.mulf %99, %98 : vector<8x128xf32>
    %cst_48 = arith.constant 5.000000e-01 : f32
    %101 = vector.broadcast %cst_48 : f32 to vector<8x128xf32>
    %102 = arith.addf %100, %101 : vector<8x128xf32>
    %103 = math.tanh %95 : vector<8x128xf32>
    %c96_i32_49 = arith.constant 96 : i32
    %104 = tpu.dynamic_rotate %102 by %c96_i32_49 dim 1 : vector<8x128xf32>, i32 -> vector<8x128xf32>
    %c64_i32_50 = arith.constant 64 : i32
    %105 = tpu.dynamic_rotate %103 by %c64_i32_50 dim 1 : vector<8x128xf32>, i32 -> vector<8x128xf32>
    %c32_i32_51 = arith.constant 32 : i32
    %106 = tpu.dynamic_rotate %102 by %c32_i32_51 dim 1 : vector<8x128xf32>, i32 -> vector<8x128xf32>
    %107 = arith.mulf %104, %90 : vector<8x128xf32>
    %108 = arith.mulf %102, %105 : vector<8x128xf32>
    %109 = arith.addf %107, %108 : vector<8x128xf32>
    %110 = math.tanh %109 : vector<8x128xf32>
    %111 = arith.mulf %106, %110 : vector<8x128xf32>
    %112 = arith.addi %13, %c3_i32 : i32
    %c8_i32_52 = arith.constant 8 : i32
    %113 = arith.cmpi slt, %112, %c8_i32_52 : i32
    %114 = arith.select %113, %111, %89 : vector<8x128xf32>
    %115 = arith.select %113, %109, %90 : vector<8x128xf32>
    %c4_i32_53 = arith.constant 4 : i32
    %c0_54 = arith.constant 0 : index
    %c0_55 = arith.constant 0 : index
    %116 = vector.load %arg12[%c0_54, %c0_55] : memref<8x128xf32, #tpu.memory_space<vmem>>, vector<8x128xf32>
    tpu.vector_store %arg12[%c0_54, %c0_55], %114 {strides = array<i32>} : memref<8x128xf32, #tpu.memory_space<vmem>>, vector<8x128xf32>,
    %c0_56 = arith.constant 0 : index
    %c0_57 = arith.constant 0 : index
    %117 = vector.load %arg13[%c0_56, %c0_57] : memref<8x128xf32, #tpu.memory_space<vmem>>, vector<8x128xf32>
    tpu.vector_store %arg13[%c0_56, %c0_57], %115 {strides = array<i32>} : memref<8x128xf32, #tpu.memory_space<vmem>>, vector<8x128xf32>,
    %c1_i32_58 = arith.constant 1 : i32
    %118 = arith.cmpi eq, %arg1, %c1_i32_58 : i32
    %119 = arith.extui %118 : i1 to i32
    %c0_i32_59 = arith.constant 0 : i32
    %120 = arith.cmpi ne, %119, %c0_i32_59 : i32
    scf.if %120 {
      %c0_60 = arith.constant 0 : index
      %c0_61 = arith.constant 0 : index
      %121 = vector.load %arg6[%c0_60, %c0_61] : memref<128x256xf32, #tpu.memory_space<vmem>>, vector<128x256xf32>
      %cst_62 = arith.constant dense<0.000000e+00> : vector<8x256xf32>
      %122 = tpu.matmul %114, %121, %cst_62 {dimension_numbers = #tpu.dot_dimension_numbers<[1], [0], [0], [1], [0, 0, 1, 1], [], []>} : vector<8x128xf32>, vector<128x256xf32>, vector<8x256xf32> -> vector<8x256xf32>
      %c0_63 = arith.constant 0 : index
      %c0_64 = arith.constant 0 : index
      %123 = vector.load %arg7[%c0_63, %c0_64] : memref<1x256xf32, #tpu.memory_space<vmem>>, vector<1x256xf32>
      %124 = vector.broadcast %123 : vector<1x256xf32> to vector<8x256xf32>
      %125 = arith.addf %122, %124 : vector<8x256xf32>
      %cst_65 = arith.constant 0.000000e+00 : f32
      %126 = vector.broadcast %cst_65 : f32 to vector<8x256xf32>
      %127 = arith.maximumf %125, %126 : vector<8x256xf32>
      %c0_66 = arith.constant 0 : index
      %c0_67 = arith.constant 0 : index
      %128 = vector.load %arg8[%c0_66, %c0_67] : memref<256x128xf32, #tpu.memory_space<vmem>>, vector<256x128xf32>
      %cst_68 = arith.constant dense<0.000000e+00> : vector<8x128xf32>
      %129 = tpu.matmul %127, %128, %cst_68 {dimension_numbers = #tpu.dot_dimension_numbers<[1], [0], [0], [1], [0, 0, 1, 1], [], []>} : vector<8x256xf32>, vector<256x128xf32>, vector<8x128xf32> -> vector<8x128xf32>
      %c0_69 = arith.constant 0 : index
      %c0_70 = arith.constant 0 : index
      %130 = vector.load %arg9[%c0_69, %c0_70] : memref<1x128xf32, #tpu.memory_space<vmem>>, vector<1x128xf32>
      %131 = vector.broadcast %130 : vector<1x128xf32> to vector<8x128xf32>
      %132 = arith.addf %129, %131 : vector<8x128xf32>
      %133 = vector.extract_strided_slice %132 {offsets = [0, 0], sizes = [8, 1], strides = [1, 1]} : vector<8x128xf32> to vector<8x1xf32>
      %134 = tpu.iota {dimensions = array<i32: 1>} : vector<8x128xi32>
      %c1_i32_71 = arith.constant 1 : i32
      %135 = vector.broadcast %c1_i32_71 : i32 to vector<8x128xi32>
      %136 = arith.cmpi sge, %134, %135 : vector<8x128xi32>
      %c5_i32 = arith.constant 5 : i32
      %137 = vector.broadcast %c5_i32 : i32 to vector<8x128xi32>
      %138 = arith.cmpi slt, %134, %137 : vector<8x128xi32>
      %139 = arith.andi %136, %138 : vector<8x128xi1>
      %cst_72 = arith.constant 0.000000e+00 : f32
      %140 = vector.broadcast %cst_72 : f32 to vector<8x128xf32>
      %141 = arith.select %139, %132, %140 : vector<8x128xi1>, vector<8x128xf32>
      %cst_73 = arith.constant dense<0.000000e+00> : vector<8xf32>
      %142 = vector.multi_reduction <add>, %141, %cst_73 [1] : vector<8x128xf32> to vector<8xf32>
      %143 = vector.shape_cast %142 : vector<8xf32> to vector<8x1xf32>
      %cst_74 = arith.constant 2.500000e-01 : f32
      %144 = vector.broadcast %cst_74 : f32 to vector<8x1xf32>
      %145 = arith.mulf %143, %144 : vector<8x1xf32>
      %146 = arith.subf %133, %145 : vector<8x1xf32>
      %147 = vector.broadcast %146 : vector<8x1xf32> to vector<8x128xf32>
      %148 = arith.addf %132, %147 : vector<8x128xf32>
      %c0_75 = arith.constant 0 : index
      %c0_76 = arith.constant 0 : index
      %149 = vector.load %arg10[%c0_75, %c0_76] : memref<8x128xf32, #tpu.memory_space<vmem>>, vector<8x128xf32>
      tpu.vector_store %arg10[%c0_75, %c0_76], %148 {strides = array<i32>} : memref<8x128xf32, #tpu.memory_space<vmem>>, vector<8x128xf32>,
    } else {
    }
    return
  }
  func.func @transform_0(%arg0: i32, %arg1: i32) -> (i32, i32, i32) {
    %c0_i32 = arith.constant 0 : i32
    %c0_i32_0 = arith.constant 0 : i32
    return %arg1, %arg0, %c0_i32 : i32, i32, i32
  }
  func.func @transform_1(%arg0: i32, %arg1: i32) -> (i32, i32) {
    %c0_i32 = arith.constant 0 : i32
    %c0_i32_0 = arith.constant 0 : i32
    %c0_i32_1 = arith.constant 0 : i32
    return %c0_i32, %c0_i32_0 : i32, i32
  }
  func.func @transform_2(%arg0: i32, %arg1: i32) -> (i32, i32) {
    %c0_i32 = arith.constant 0 : i32
    %c0_i32_0 = arith.constant 0 : i32
    %c0_i32_1 = arith.constant 0 : i32
    return %c0_i32, %c0_i32_0 : i32, i32
  }
  func.func @transform_3(%arg0: i32, %arg1: i32) -> (i32, i32) {
    %c0_i32 = arith.constant 0 : i32
    %c0_i32_0 = arith.constant 0 : i32
    %c0_i32_1 = arith.constant 0 : i32
    return %c0_i32, %c0_i32_0 : i32, i32
  }
  func.func @transform_4(%arg0: i32, %arg1: i32) -> (i32, i32) {
    %c0_i32 = arith.constant 0 : i32
    %c0_i32_0 = arith.constant 0 : i32
    %c0_i32_1 = arith.constant 0 : i32
    return %c0_i32, %c0_i32_0 : i32, i32
  }
  func.func @transform_5(%arg0: i32, %arg1: i32) -> (i32, i32) {
    %c0_i32 = arith.constant 0 : i32
    %c0_i32_0 = arith.constant 0 : i32
    %c0_i32_1 = arith.constant 0 : i32
    return %c0_i32, %c0_i32_0 : i32, i32
  }
  func.func @transform_6(%arg0: i32, %arg1: i32) -> (i32, i32) {
    %c0_i32 = arith.constant 0 : i32
    %c0_i32_0 = arith.constant 0 : i32
    %c0_i32_1 = arith.constant 0 : i32
    return %c0_i32, %c0_i32_0 : i32, i32
  }
  func.func @transform_7(%arg0: i32, %arg1: i32) -> (i32, i32) {
    %c0_i32 = arith.constant 0 : i32
    %c0_i32_0 = arith.constant 0 : i32
    %c0_i32_1 = arith.constant 0 : i32
    return %c0_i32, %c0_i32_0 : i32, i32
  }
  func.func @transform_8(%arg0: i32, %arg1: i32) -> (i32, i32) {
    %c0_i32 = arith.constant 0 : i32
    %c0_i32_0 = arith.constant 0 : i32
    return %arg0, %c0_i32 : i32, i32
  }
}

</mosaic_0001>

<bundles_post_ra>
// kernel: santa_fe_lstm_forward.1
= control target key start
LH: loop header
LB: loop body
LE: loop exit
PB: predicated region body
PF: predicated region fallthrough
CT: control target
= control target key end

     0   :  { %13 = vsyncpa [#allocation6], 0  ;;  %s1338_s0 = inlined_call_operand.vmem [shape: f32[8,8,8], index: 0, kind: input, shape index: {}]   ;;  %s1339_s1 = inlined_call_operand.vmem [shape: f32[8,128], index: 1, kind: input, shape index: {}]   ;;  %s1340_s2 = inlined_call_operand.hbm [shape: f32[128,128], index: 2, kind: input, shape index: {}]   ;;  %s1341_s3 = inlined_call_operand.vmem [shape: f32[1,128], index: 3, kind: input, shape index: {}]   ;;  %s1342_s4 = inlined_call_operand.hbm [shape: f32[128,256], index: 4, kind: input, shape index: {}]   ;;  %s1343_s5 = inlined_call_operand.vmem [shape: f32[1,256], index: 5, kind: input, shape index: {}]   ;;  %s1344_s6 = inlined_call_operand.hbm [shape: f32[256,128], index: 6, kind: input, shape index: {}]   ;;  %s1345_s7 = inlined_call_operand.vmem [shape: f32[1,128], index: 7, kind: input, shape index: {}]   ;;  %s1346_s8 = inlined_call_operand.vmem [shape: f32[8,128], index: 8, kind: output, shape index: {}]  }
   0x1   :  { %14 = vsyncpa [#allocation8], 0  ;;  %s1205_s27 = smov 0   ;;  %s1207_s28 = smov 0  }
   0x2   :  { %s1209_s29 = smov 0  }
   0x3 LB: > { %s269_s10 = sshll.u32 %s1342_s4, 4  ;;  %s913_s11 = sadd.s32 4294967295, %s1146_s29   ;;  %s1146_s29 = sphi %s1209_s29, %s20_s29   ;;  %s1142_s28 = sphi %s1207_s28, %s1351_s28   ;;  %s1138_s27 = sphi %s1205_s27, %s1350_s27   ;;  %s270_s10 = int_to_ptr.hbm [resolvable:$true] %s269_s10 }
   0x4   : > { %p914_p0 = scmp.ge.s32.totalorder %s1146_s29, 1  ;;  %p238_p1 = scmp.lt.s32.totalorder %s1146_s29, 3 }
   0x5   : > { %p1226_p2 = scmp.eq.s32.totalorder %s913_s11, 0  ;;  %s1148_s14 = smov [#allocation7]  }
   0x6   : > { %p1230_p3 = pnand %p914_p0, %p238_p1  ;;  %s271_s15 = sshll.u32 %s1148_s14, 4  ;;  %s272_s15 = int_to_ptr.vmem [resolvable:$true] %s271_s15 }
   0x7   : > { %s29_s17 = sadd.s32 1, %s1142_s28  ;;  %s1149_s18 = smov 256  }
   0x8   : > { %p947_p4 = pneg %p1230_p3  ;;  %p30_p6 = scmp.ge.s32.totalorder %s29_s17, 2 }
   0x9   : > { %s1150_s19 = smov 16   ;;  %s252_s22 = sshll.u32 %s1340_s2, 4  ;;  %s253_s22 = int_to_ptr.hbm [resolvable:$true] %s252_s22 }
   0xa   : > { %p1238_p5 = pnand %p1226_p2, %p947_p4  ;;  %s1353_s17 = smov (%p30_p6, %s29_s17), 0 }
   0xb   : > { %s1151_s23 = smov [#allocation5]   ;;  %s286_s30 = sshll.u32 %s1344_s6, 4  ;;  %s287_s30 = int_to_ptr.hbm [resolvable:$true] %s286_s30 }
   0xc   : > { %953 = dma.hbm_to_vmem [thread:$0]  (!%p1238_p5), %s270_s10, 4096, %s272_s15, [#allocation8], %s1149_s18, %s1149_s18, %s1150_s19  }
   0xd   : > { %s254_s24 = sshll.u32 %s1151_s23, 4  ;;  %s1152_s9 = smov 128   ;;  %s255_s24 = int_to_ptr.vmem [resolvable:$true] %s254_s24 }
   0xe   : > { %s1153_s11 = smov 8   ;;  %s1154_s10 = smov [#allocation9]  }
   0xf   : > { %950 = dma.hbm_to_vmem [thread:$0]  (!%p1238_p5), %s253_s22, 2048, %s255_s24, [#allocation6], %s1152_s9, %s1152_s9, %s1153_s11  }
  0x10   : > { %s288_s14 = sshll.u32 %s1154_s10, 4  ;;  %319 = sbr.rel (%p1230_p3) target bundleno = 1704 (0x6a8), region = 52  ;;  %s289_s14 = int_to_ptr.vmem [resolvable:$true] %s288_s14 }
  0x11   : > { %956 = dma.hbm_to_vmem [thread:$0]  (!%p1238_p5), %s287_s30, 4096, %s289_s14, [#allocation8], %s1152_s9, %s1152_s9, %s1153_s11  }
  0x15   : > { %1129 = dma.done.wait (%p1226_p2), [#allocation6], 2048  }
  0x16   : > { %1131 = vsyncadd (%p1226_p2), [#allocation6], 4294965248 }
  0x17   : > { %1133 = dma.done.wait (%p1226_p2), [#allocation8], 8192  }
  0x18   : > { %1135 = vsyncadd (%p1226_p2), [#allocation8], 4294959104  ;;  %s1268_s15 = sshll.u32 %s1138_s27, 2  ;;  %p925_p8 = scmp.ne.s32.totalorder %s1138_s27, 0 }
  0x19   : > { %p367_p7 = scmp.lt.s32.totalorder %s1268_s15, 7 }
  0x1a   : > { %382 = sbr.rel (%p925_p8) target bundleno = 34 (0x22), region = 68 }
  0x1b   : > { %s368_s13 = scalar_select %p367_p7, %s1268_s15, 7 }
  0x1d   : > { %s924_s16 = sshll.u32 %s368_s13, 3 }
  0x1e   : > { %s1275_s20 = scalar_lea.vmem %s1338_s0, %s924_s16 }
  0x1f   : > { %v1155_v0 = vmov 0.0  }
  0x20   : > { %383 = vst [vmem:[#allocation3] sm:$0xff] %v1155_v0 }
  0x21   : > { %384 = vst [vmem:[#allocation4] sm:$0xff] %v1155_v0 }
  0x22 PF: > { %v455_v1 = vld [vmem:[#allocation5 + $0x78] sm:$0xff]  ;;  %v454_v2 = vld [vmem:[#allocation5 + $0x70] sm:$0xff]  ;;  %v453_v3 = vld [vmem:[#allocation5 + $0x68] sm:$0xff]  ;;  %vm394_vm0 = vcmask 64512   ;;  %s1156_s24 = smov 32   ;;  %s1157_s25 = smov 96  }
  0x23   : > { %460 = vmatpush.msra.mxu1 %v455_v1  ;;  %505 = vmatpush.msra.mxu2 %v455_v1  ;;  %v452_v4 = vld [vmem:[#allocation5 + $0x60] sm:$0xff]  ;;  %v389_v5 = vld [vmem:[%s1339_s1] sm:$0xff]  ;;  %v451_v7 = vld [vmem:[#allocation5 + $0x58] sm:$0xff]  ;;  %s1158_s26 = smov 64   ;;  %p497_p9 = scmp.lt.s32.totalorder %s1268_s15, 8 }
  0x24   : > { %551 = vmatpush.msra.mxu3 %v455_v1  ;;  %422 = vmatpush.msra.mxu0 %v389_v5  ;;  %v385_v6 = vld [vmem:[%s1275_s20] sm:$0xff]  ;;  %v449_v9 = vld [vmem:[#allocation5 + $0x48] sm:$0xff]  ;;  %v448_v10 = vld [vmem:[#allocation5 + $0x40] sm:$0xff]  ;;  %s542_s9 = sadd.s32 1, %s1268_s15  ;;  %s588_s10 = sadd.s32 2, %s1268_s15 }
  0x25   : > { %461 = vmatpush.msra.mxu1 %v454_v2  ;;  %506 = vmatpush.msra.mxu2 %v454_v2  ;;  %v450_v8 = vld [vmem:[#allocation5 + $0x50] sm:$0xff]  ;;  %v447_v11 = vld [vmem:[#allocation5 + $0x38] sm:$0xff]  ;;  %v445_v13 = vld [vmem:[#allocation5 + $0x28] sm:$0xff]  ;;  %s498_s30 = scalar_select %p497_p9, 1, 0 }
  0x26   : > { %552 = vmatpush.msra.mxu3 %v454_v2  ;;  %926 = vmatmul.msk.f32.vlgmr.msra.gmra.mxu0 %vm394_vm0, %v385_v6  ;;  %v446_v12 = vld [vmem:[#allocation5 + $0x30] sm:$0xff]  ;;  %v444_v14 = vld [vmem:[#allocation5 + $0x20] sm:$0xff]  ;;  %v443_v15 = vld [vmem:[#allocation5 + $0x18] sm:$0xff]  ;;  %p543_p10 = scmp.lt.s32.totalorder %s542_s9, 8  ;;  %p589_p11 = scmp.lt.s32.totalorder %s588_s10, 8 }
  0x27   : > { %462 = vmatpush.msra.mxu1 %v453_v3  ;;  %507 = vmatpush.msra.mxu2 %v453_v3  ;;  %v442_v16 = vld [vmem:[#allocation5 + $0x10] sm:$0xff]  ;;  %v441_v17 = vld [vmem:[#allocation5 + $0x8] sm:$0xff]  ;;  %v440_v18 = vld [vmem:[#allocation5] sm:$0xff]  ;;  %v499_v33 = vstv %s498_s30  ;;  %s634_s13 = sadd.s32 3, %s1268_s15  ;;  %p931_p13 = scmp.ne.s32.totalorder %s1138_s27, 1 }
  0x28   : > { %553 = vmatpush.msra.mxu3 %v453_v3  ;;  %597 = vmatpush.msrb.mxu0 %v455_v1  ;;  %v457_v19 = vld [vmem:[#allocation3] sm:$0xff]  ;;  %v386_v30 = vld [vmem:[%s1275_s20 + $0x8] sm:$0xff]  ;;  %vm500_vm1 = vcmp.eq.s32.totalorder %v499_v33, 1  ;;  %v387_v52 = vld [vmem:[%s1275_s20 + $0x10] sm:$0xff]  ;;  %s544_s11 = scalar_select %p543_p10, 1, 0 }
  0x29   : > { %463 = vmatpush.msra.mxu1 %v452_v4  ;;  %508 = vmatpush.msra.mxu2 %v452_v4  ;;  %v1286_v20 = vld [vmem:[%s1341_s3] ss:$0 sm:$0xff]  ;;  %v458_v32 = vld [vmem:[#allocation4] sm:$0xff]  ;;  %s590_s14 = scalar_select %p589_p11, 1, 0 }
  0x2a   : > { %554 = vmatpush.msra.mxu3 %v452_v4  ;;  %598 = vmatpush.msrb.mxu0 %v454_v2  ;;  %v545_v54 = vstv %s544_s11  ;;  %p635_p12 = scmp.lt.s32.totalorder %s634_s13, 8 }
  0x2b   : > { %464 = vmatpush.msra.mxu1 %v451_v7  ;;  %509 = vmatpush.msra.mxu2 %v451_v7  ;;  %vm546_vm2 = vcmp.eq.s32.totalorder %v545_v54, 1 }
  0x2c   : > { %555 = vmatpush.msra.mxu3 %v451_v7  ;;  %599 = vmatpush.msrb.mxu0 %v453_v3  ;;  %s636_s16 = scalar_select %p635_p12, 1, 0 }
  0x2d   : > { %465 = vmatpush.msra.mxu1 %v450_v8  ;;  %510 = vmatpush.msra.mxu2 %v450_v8 }
  0x2e   : > { %556 = vmatpush.msra.mxu3 %v450_v8  ;;  %600 = vmatpush.msrb.mxu0 %v452_v4 }
  0x2f   : > { %466 = vmatpush.msra.mxu1 %v449_v9  ;;  %511 = vmatpush.msra.mxu2 %v449_v9 }
  0x30   : > { %557 = vmatpush.msra.mxu3 %v449_v9  ;;  %601 = vmatpush.msrb.mxu0 %v451_v7 }
  0x31   : > { %467 = vmatpush.msra.mxu1 %v448_v10  ;;  %512 = vmatpush.msra.mxu2 %v448_v10 }
  0x32   : > { %558 = vmatpush.msra.mxu3 %v448_v10  ;;  %602 = vmatpush.msrb.mxu0 %v450_v8 }
  0x33   : > { %468 = vmatpush.msra.mxu1 %v447_v11  ;;  %513 = vmatpush.msra.mxu2 %v447_v11 }
  0x34   : > { %559 = vmatpush.msra.mxu3 %v447_v11  ;;  %603 = vmatpush.msrb.mxu0 %v449_v9  ;;  %v388_v9 = vld [vmem:[%s1275_s20 + $0x18] sm:$0xff] }
  0x35   : > { %469 = vmatpush.msra.mxu1 %v446_v12  ;;  %514 = vmatpush.msra.mxu2 %v446_v12 }
  0x36   : > { %560 = vmatpush.msra.mxu3 %v446_v12  ;;  %604 = vmatpush.msrb.mxu0 %v448_v10 }
  0x37   : > { %470 = vmatpush.msra.mxu1 %v445_v13  ;;  %515 = vmatpush.msra.mxu2 %v445_v13 }
  0x38   : > { %561 = vmatpush.msra.mxu3 %v445_v13  ;;  %605 = vmatpush.msrb.mxu0 %v447_v11  ;;  %v591_v11 = vstv %s590_s14 }
  0x39   : > { %471 = vmatpush.msra.mxu1 %v444_v14  ;;  %516 = vmatpush.msra.mxu2 %v444_v14  ;;  %vm592_vm3 = vcmp.eq.s32.totalorder %v591_v11, 1 }
  0x3a   : > { %562 = vmatpush.msra.mxu3 %v444_v14  ;;  %606 = vmatpush.msrb.mxu0 %v446_v12 }
  0x3b   : > { %472 = vmatpush.msra.mxu1 %v443_v15  ;;  %517 = vmatpush.msra.mxu2 %v443_v15 }
  0x3c   : > { %563 = vmatpush.msra.mxu3 %v443_v15  ;;  %607 = vmatpush.msrb.mxu0 %v445_v13 }
  0x3d   : > { %473 = vmatpush.msra.mxu1 %v442_v16  ;;  %518 = vmatpush.msra.mxu2 %v442_v16 }
  0x3e   : > { %564 = vmatpush.msra.mxu3 %v442_v16  ;;  %608 = vmatpush.msrb.mxu0 %v444_v14 }
  0x3f   : > { %474 = vmatpush.msra.mxu1 %v441_v17  ;;  %519 = vmatpush.msra.mxu2 %v441_v17 }
  0x40   : > { %565 = vmatpush.msra.mxu3 %v441_v17  ;;  %609 = vmatpush.msrb.mxu0 %v443_v15 }
  0x41   : > { %475 = vmatpush.msra.mxu1 %v440_v18  ;;  %520 = vmatpush.msra.mxu2 %v440_v18 }
  0x42   : > { %476 = vmatmul.f32.vlgmr.msra.gmra.mxu1 %v457_v19  ;;  %566 = vmatpush.msra.mxu3 %v440_v18 }
  0x43   : > { %610 = vmatpush.msrb.mxu0 %v442_v16 }
  0x44   : > { %927 = vmatmul.msk.f32.gmra.mxu0 %vm394_vm0, %v386_v30 }
  0x45   : > { %611 = vmatpush.msrb.mxu0 %v441_v17 }
  0x47   : > { %612 = vmatpush.msrb.mxu0 %v440_v18 }
  0x4c   : > { %928 = vmatmul.msk.f32.gmra.mxu0 %vm394_vm0, %v387_v52 }
  0x54   : > { %929 = vmatmul.msk.f32.gmra.mxu0 %vm394_vm0, %v388_v9 }
  0xa3   : > { %v424_v21 = vpop.f32.mrf.mxu0 }
  0xa4   : > { %v425_v22 = vadd.f32 %v1286_v20, %v424_v21 }
  0xbf   : > { %v477_v23 = vpop.f32.mrf.mxu1 }
  0xc0   : > { %v480_v24 = vadd.f32 %v477_v23, %v425_v22 }
  0xc1   : > { %v427_v43 = vpop.f32.mrf.mxu0 }
  0xc2   : > { %v481_v25 = vmul.f32 0.5, %v480_v24  ;;  %v428_v44 = vadd.f32 %v1286_v20, %v427_v43 }
  0xc4   : > { %1000 = vtanh.f32 %v481_v25 }
  0xc5   : > { %1002 = vtanh.f32 %v480_v24 }
  0xc9   : > { %v430_v0 = vpop.f32.mrf.mxu0 }
  0xca   : > { %v1001_v26 = vpop.eup %1000  ;;  %v431_v1 = vadd.f32 %v1286_v20, %v430_v0 }
  0xcb   : > { %v483_v27 = vmul.f32 0.5, %v1001_v26  ;;  %v1003_v29 = vpop.eup %1002 }
  0xcd   : > { %v484_v28 = vadd.f32 0.5, %v483_v27 }
  0xcf   : > { %490 = vrot.lane.b32.xlu1 %v484_v28, %s1156_s24  ;;  %486 = vrot.lane.b32.xlu0 %v484_v28, %s1157_s25 }
  0xd1   : > { %v433_v22 = vpop.f32.mrf.mxu0 }
  0xd2   : > { %v434_v23 = vadd.f32 %v1286_v20, %v433_v22  ;;  %v637_v20 = vstv %s636_s16 }
  0xd3   : > { %vm638_vm4 = vcmp.eq.s32.totalorder %v637_v20, 1 }
  0xd7   : > { %488 = vrot.lane.b32.xlu0 %v1003_v29, %s1158_s26 }
 0x141   : > { %v487_v31 = vpop.permute.xlu0 %486  ;;  %v491_v40 = vpop.permute.xlu1 %490 }
 0x142   : > { %v492_v35 = vmul.f32 %v487_v31, %v458_v32 }
 0x149   : > { %v489_v34 = vpop.permute.xlu0 %488 }
 0x14a   : > { %v493_v36 = vmul.f32 %v489_v34, %v484_v28 }
 0x14c   : > { %v494_v37 = vadd.f32 %v493_v36, %v492_v35 }
 0x14e   : > { %1004 = vtanh.f32 %v494_v37  ;;  %v502_v38 = vsel %vm500_vm1, %v494_v37, %v458_v32 }
 0x154   : > { %v1005_v39 = vpop.eup %1004 }
 0x155   : > { %v496_v41 = vmul.f32 %v1005_v39, %v491_v40 }
 0x157   : > { %v501_v42 = vsel %vm500_vm1, %v496_v41, %v457_v19 }
 0x158   : > { %521 = vmatmul.f32.vlgmr.msra.gmra.mxu2 %v501_v42 }
 0x1db   : > { %v522_v45 = vpop.f32.mrf.mxu2 }
 0x1dc   : > { %v525_v46 = vadd.f32 %v522_v45, %v428_v44 }
 0x1de   : > { %v526_v47 = vmul.f32 0.5, %v525_v46  ;;  %1006 = vtanh.f32 %v525_v46 }
 0x1e0   : > { %1008 = vtanh.f32 %v526_v47 }
 0x1e4   : > { %v1007_v48 = vpop.eup %1006 }
 0x1e5   : > { %533 = vrot.lane.b32.xlu2 %v1007_v48, %s1158_s26 }
 0x1e6   : > { %v1009_v49 = vpop.eup %1008 }
 0x1e7   : > { %v528_v50 = vmul.f32 0.5, %v1009_v49 }
 0x1e9   : > { %v529_v51 = vadd.f32 0.5, %v528_v50 }
 0x1eb   : > { %531 = vrot.lane.b32.xlu1 %v529_v51, %s1157_s25 }
 0x1ed   : > { %535 = vrot.lane.b32.xlu2 %v529_v51, %s1156_s24 }
 0x23f   : > { %v534_v53 = vpop.permute.xlu2 %533 }
 0x240   : > { %v538_v56 = vmul.f32 %v534_v53, %v529_v51 }
 0x247   : > { %v536_v61 = vpop.permute.xlu2 %535 }
 0x25d   : > { %v532_v55 = vpop.permute.xlu1 %531 }
 0x25e   : > { %v537_v57 = vmul.f32 %v532_v55, %v502_v38 }
 0x260   : > { %v539_v58 = vadd.f32 %v538_v56, %v537_v57 }
 0x262   : > { %1010 = vtanh.f32 %v539_v58  ;;  %v548_v59 = vsel %vm546_vm2, %v539_v58, %v502_v38 }
 0x268   : > { %v1011_v60 = vpop.eup %1010 }
 0x269   : > { %v541_v62 = vmul.f32 %v1011_v60, %v536_v61 }
 0x26b   : > { %v547_v63 = vsel %vm546_vm2, %v541_v62, %v501_v42 }
 0x26c   : > { %567 = vmatmul.f32.vlgmr.msra.gmra.mxu3 %v547_v63 }
 0x2ef   : > { %v568_v2 = vpop.f32.mrf.mxu3 }
 0x2f0   : > { %v571_v3 = vadd.f32 %v568_v2, %v431_v1 }
 0x2f2   : > { %v572_v4 = vmul.f32 0.5, %v571_v3  ;;  %1012 = vtanh.f32 %v571_v3 }
 0x2f4   : > { %1014 = vtanh.f32 %v572_v4 }
 0x2f8   : > { %v1013_v5 = vpop.eup %1012 }
 0x2f9   : > { %579 = vrot.lane.b32.xlu1 %v1013_v5, %s1158_s26 }
 0x2fa   : > { %v1015_v6 = vpop.eup %1014 }
 0x2fb   : > { %v574_v7 = vmul.f32 0.5, %v1015_v6 }
 0x2fd   : > { %v575_v8 = vadd.f32 0.5, %v574_v7 }
 0x2ff   : > { %581 = vrot.lane.b32.xlu2 %v575_v8, %s1156_s24  ;;  %577 = vrot.lane.b32.xlu0 %v575_v8, %s1157_s25 }
 0x359   : > { %v582_v18 = vpop.permute.xlu2 %581 }
 0x36b   : > { %v580_v10 = vpop.permute.xlu1 %579 }
 0x36c   : > { %v584_v13 = vmul.f32 %v580_v10, %v575_v8 }
 0x371   : > { %v578_v12 = vpop.permute.xlu0 %577 }
 0x372   : > { %v583_v14 = vmul.f32 %v578_v12, %v548_v59 }
 0x374   : > { %v585_v15 = vadd.f32 %v584_v13, %v583_v14 }
 0x376   : > { %1016 = vtanh.f32 %v585_v15  ;;  %v594_v16 = vsel %vm592_vm3, %v585_v15, %v548_v59 }
 0x37c   : > { %v1017_v17 = vpop.eup %1016 }
 0x37d   : > { %v587_v19 = vmul.f32 %v1017_v17, %v582_v18 }
 0x37f   : > { %v593_v21 = vsel %vm592_vm3, %v587_v19, %v547_v63 }
 0x380   : > { %613 = vmatmul.f32.vlgmr.msrb.gmra.mxu0 %v593_v21 }
 0x3fd   : > { %v614_v24 = vpop.f32.mrf.mxu0 }
 0x3fe   : > { %v617_v25 = vadd.f32 %v614_v24, %v434_v23 }
 0x400   : > { %v618_v26 = vmul.f32 0.5, %v617_v25  ;;  %1018 = vtanh.f32 %v617_v25 }
 0x402   : > { %1020 = vtanh.f32 %v618_v26 }
 0x406   : > { %v1019_v27 = vpop.eup %1018 }
 0x407   : > { %625 = vrot.lane.b32.xlu1 %v1019_v27, %s1158_s26 }
 0x408   : > { %v1021_v28 = vpop.eup %1020 }
 0x409   : > { %v620_v29 = vmul.f32 0.5, %v1021_v28 }
 0x40b   : > { %v621_v30 = vadd.f32 0.5, %v620_v29 }
 0x40d   : > { %627 = vrot.lane.b32.xlu2 %v621_v30, %s1156_s24  ;;  %623 = vrot.lane.b32.xlu0 %v621_v30, %s1157_s25 }
 0x467   : > { %v628_v38 = vpop.permute.xlu2 %627 }
 0x479   : > { %v626_v31 = vpop.permute.xlu1 %625 }
 0x47a   : > { %v630_v33 = vmul.f32 %v626_v31, %v621_v30 }
 0x47f   : > { %v624_v32 = vpop.permute.xlu0 %623 }
 0x480   : > { %v629_v34 = vmul.f32 %v624_v32, %v594_v16 }
 0x482   : > { %v631_v35 = vadd.f32 %v630_v33, %v629_v34 }
 0x484   : > { %1022 = vtanh.f32 %v631_v35  ;;  %v640_v36 = vsel %vm638_vm4, %v631_v35, %v594_v16 }
 0x485   : > { %642 = vst [vmem:[#allocation4] sm:$0xff] %v640_v36 }
 0x48a   : > { %v1023_v37 = vpop.eup %1022  ;;  %646 = sbr.rel (%p931_p13) target bundleno = 1704 (0x6a8), region = 72 }
 0x48b   : > { %v633_v39 = vmul.f32 %v1023_v37, %v628_v38 }
 0x48d   : > { %v1314_v40 = vsel %vm638_vm4, %v633_v39, %v593_v21 }
 0x48e   : > { %641 = vst [vmem:[#allocation3] sm:$0xff] %v1314_v40 }
 0x48f   : > { %v677_v41 = vld [vmem:[#allocation7 + $0xf0] sm:$0xff]  ;;  %v675_v42 = vld [vmem:[#allocation7 + $0xe0] sm:$0xff]  ;;  %v678_v43 = vld [vmem:[#allocation7 + $0xf8] sm:$0xff] }
 0x490   : > { %685 = vmatpush.msra.mxu0 %v677_v41  ;;  %705 = vmatpush.msra.mxu1 %v678_v43  ;;  %v676_v44 = vld [vmem:[#allocation7 + $0xe8] sm:$0xff]  ;;  %v673_v45 = vld [vmem:[#allocation7 + $0xd0] sm:$0xff]  ;;  %v674_v46 = vld [vmem:[#allocation7 + $0xd8] sm:$0xff] }
 0x491   : > { %v671_v47 = vld [vmem:[#allocation7 + $0xc0] sm:$0xff]  ;;  %v672_v48 = vld [vmem:[#allocation7 + $0xc8] sm:$0xff]  ;;  %v669_v49 = vld [vmem:[#allocation7 + $0xb0] sm:$0xff] }
 0x492   : > { %686 = vmatpush.msra.mxu0 %v675_v42  ;;  %706 = vmatpush.msra.mxu1 %v676_v44  ;;  %v670_v50 = vld [vmem:[#allocation7 + $0xb8] sm:$0xff]  ;;  %v667_v51 = vld [vmem:[#allocation7 + $0xa0] sm:$0xff]  ;;  %v668_v52 = vld [vmem:[#allocation7 + $0xa8] sm:$0xff] }
 0x493   : > { %v665_v53 = vld [vmem:[#allocation7 + $0x90] sm:$0xff]  ;;  %v666_v54 = vld [vmem:[#allocation7 + $0x98] sm:$0xff]  ;;  %v663_v58 = vld [vmem:[#allocation7 + $0x80] sm:$0xff] }
 0x494   : > { %687 = vmatpush.msra.mxu0 %v673_v45  ;;  %707 = vmatpush.msra.mxu1 %v674_v46  ;;  %v742_v55 = vld [vmem:[#allocation9 + $0x78] sm:$0xff]  ;;  %v741_v56 = vld [vmem:[#allocation9 + $0x70] sm:$0xff]  ;;  %v664_v59 = vld [vmem:[#allocation7 + $0x88] sm:$0xff] }
 0x495   : > { %v758_v57 = vld [vmem:[#allocation9 + $0xf8] sm:$0xff]  ;;  %763 = vmatpush.msra.mxu2 %v742_v55  ;;  %v757_v60 = vld [vmem:[#allocation9 + $0xf0] sm:$0xff]  ;;  %v740_v61 = vld [vmem:[#allocation9 + $0x68] sm:$0xff] }
 0x496   : > { %688 = vmatpush.msra.mxu0 %v671_v47  ;;  %708 = vmatpush.msra.mxu1 %v672_v48  ;;  %v756_v62 = vld [vmem:[#allocation9 + $0xe8] sm:$0xff]  ;;  %v661_v63 = vld [vmem:[#allocation7 + $0x70] sm:$0xff]  ;;  %v662_v0 = vld [vmem:[#allocation7 + $0x78] sm:$0xff] }
 0x497   : > { %783 = vmatpush.msra.mxu3 %v758_v57  ;;  %764 = vmatpush.msra.mxu2 %v741_v56  ;;  %v739_v1 = vld [vmem:[#allocation9 + $0x60] sm:$0xff]  ;;  %v660_v4 = vld [vmem:[#allocation7 + $0x68] sm:$0xff]  ;;  %v738_v5 = vld [vmem:[#allocation9 + $0x58] sm:$0xff] }
 0x498   : > { %689 = vmatpush.msra.mxu0 %v669_v49  ;;  %709 = vmatpush.msra.mxu1 %v670_v50  ;;  %v755_v2 = vld [vmem:[#allocation9 + $0xe0] sm:$0xff]  ;;  %v754_v6 = vld [vmem:[#allocation9 + $0xd8] sm:$0xff]  ;;  %v657_v7 = vld [vmem:[#allocation7 + $0x50] sm:$0xff]  ;;  %v803_v50 = vlaneseq }
 0x499   : > { %784 = vmatpush.msra.mxu3 %v757_v60  ;;  %v659_v3 = vld [vmem:[#allocation7 + $0x60] sm:$0xff]  ;;  %765 = vmatpush.msra.mxu2 %v740_v61  ;;  %v658_v8 = vld [vmem:[#allocation7 + $0x58] sm:$0xff]  ;;  %v737_v9 = vld [vmem:[#allocation9 + $0x50] sm:$0xff] }
 0x49a   : > { %690 = vmatpush.msra.mxu0 %v667_v51  ;;  %710 = vmatpush.msra.mxu1 %v668_v52  ;;  %v753_v10 = vld [vmem:[#allocation9 + $0xd0] sm:$0xff]  ;;  %v655_v11 = vld [vmem:[#allocation7 + $0x40] sm:$0xff]  ;;  %v656_v12 = vld [vmem:[#allocation7 + $0x48] sm:$0xff]  ;;  %v804_v51 = vand.u32 127, %v803_v50 }
 0x49b   : > { %785 = vmatpush.msra.mxu3 %v756_v62  ;;  %766 = vmatpush.msra.mxu2 %v739_v1  ;;  %v736_v13 = vld [vmem:[#allocation9 + $0x48] sm:$0xff]  ;;  %v653_v15 = vld [vmem:[#allocation7 + $0x30] sm:$0xff]  ;;  %v654_v16 = vld [vmem:[#allocation7 + $0x38] sm:$0xff] }
 0x49c   : > { %691 = vmatpush.msra.mxu0 %v665_v53  ;;  %711 = vmatpush.msra.mxu1 %v666_v54  ;;  %v752_v14 = vld [vmem:[#allocation9 + $0xc8] sm:$0xff]  ;;  %v735_v17 = vld [vmem:[#allocation9 + $0x40] sm:$0xff]  ;;  %v734_v22 = vld [vmem:[#allocation9 + $0x38] sm:$0xff]  ;;  %vm805_vm5 = vcmp.ge.s32.totalorder %v804_v51, 1  ;;  %vm806_vm6 = vcmp.lt.s32.totalorder %v804_v51, 5 }
 0x49d   : > { %786 = vmatpush.msra.mxu3 %v755_v2  ;;  %767 = vmatpush.msra.mxu2 %v738_v5  ;;  %v751_v18 = vld [vmem:[#allocation9 + $0xc0] sm:$0xff]  ;;  %v652_v21 = vld [vmem:[#allocation7 + $0x28] sm:$0xff]  ;;  %v750_v23 = vld [vmem:[#allocation9 + $0xb8] sm:$0xff] }
 0x49e   : > { %692 = vmatpush.msra.mxu0 %v663_v58  ;;  %712 = vmatpush.msra.mxu1 %v664_v59  ;;  %v651_v19 = vld [vmem:[#allocation7 + $0x20] sm:$0xff]  ;;  %v649_v24 = vld [vmem:[#allocation7 + $0x10] sm:$0xff]  ;;  %v650_v25 = vld [vmem:[#allocation7 + $0x18] sm:$0xff]  ;;  %v1159_v58 = vmov 0  }
 0x49f   : > { %787 = vmatpush.msra.mxu3 %v754_v6  ;;  %768 = vmatpush.msra.mxu2 %v737_v9  ;;  %v733_v26 = vld [vmem:[#allocation9 + $0x30] sm:$0xff]  ;;  %v647_v28 = vld [vmem:[#allocation7] sm:$0xff]  ;;  %v648_v29 = vld [vmem:[#allocation7 + $0x8] sm:$0xff] }
 0x4a0   : > { %693 = vmatpush.msra.mxu0 %v661_v63  ;;  %713 = vmatpush.msra.mxu1 %v662_v0  ;;  %v749_v27 = vld [vmem:[#allocation9 + $0xb0] sm:$0xff]  ;;  %v732_v30 = vld [vmem:[#allocation9 + $0x28] sm:$0xff]  ;;  %v731_v20 = vld [vmem:[#allocation9 + $0x20] sm:$0xff] }
 0x4a1   : > { %788 = vmatpush.msra.mxu3 %v753_v10  ;;  %769 = vmatpush.msra.mxu2 %v736_v13  ;;  %v748_v31 = vld [vmem:[#allocation9 + $0xa8] sm:$0xff]  ;;  %v747_v32 = vld [vmem:[#allocation9 + $0xa0] sm:$0xff]  ;;  %v730_v33 = vld [vmem:[#allocation9 + $0x18] sm:$0xff] }
 0x4a2   : > { %694 = vmatpush.msra.mxu0 %v659_v3  ;;  %714 = vmatpush.msra.mxu1 %v660_v4  ;;  %v729_v34 = vld [vmem:[#allocation9 + $0x10] sm:$0xff]  ;;  %v746_v35 = vld [vmem:[#allocation9 + $0x98] sm:$0xff]  ;;  %v728_v36 = vld [vmem:[#allocation9 + $0x8] sm:$0xff] }
 0x4a3   : > { %789 = vmatpush.msra.mxu3 %v752_v14  ;;  %770 = vmatpush.msra.mxu2 %v735_v17  ;;  %v745_v37 = vld [vmem:[#allocation9 + $0x90] sm:$0xff]  ;;  %v727_v38 = vld [vmem:[#allocation9] sm:$0xff]  ;;  %v744_v39 = vld [vmem:[#allocation9 + $0x88] sm:$0xff] }
 0x4a4   : > { %695 = vmatpush.msra.mxu0 %v657_v7  ;;  %715 = vmatpush.msra.mxu1 %v658_v8  ;;  %v679_v41 = vld [vmem:[%s1343_s5] sm:$0x3]  ;;  %vm807_vm7 = vmand %vm805_vm5, %vm806_vm6 }
 0x4a5   : > { %790 = vmatpush.msra.mxu3 %v751_v18  ;;  %771 = vmatpush.msra.mxu2 %v734_v22  ;;  %v681_v42 = vperm.slane %v679_v41, 0  ;;  %v682_v43 = vperm.slane %v679_v41, 1  ;;  %v1025_v52 = vld [vmem:[%s1345_s7] ss:$0 sm:$0xff] }
 0x4a6   : > { %696 = vmatpush.msra.mxu0 %v655_v11  ;;  %716 = vmatpush.msra.mxu1 %v656_v12 }
 0x4a7   : > { %791 = vmatpush.msra.mxu3 %v750_v23  ;;  %772 = vmatpush.msra.mxu2 %v733_v26 }
 0x4a8   : > { %697 = vmatpush.msra.mxu0 %v653_v15  ;;  %717 = vmatpush.msra.mxu1 %v654_v16 }
 0x4a9   : > { %792 = vmatpush.msra.mxu3 %v749_v27  ;;  %773 = vmatpush.msra.mxu2 %v732_v30 }
 0x4aa   : > { %698 = vmatpush.msra.mxu0 %v651_v19  ;;  %718 = vmatpush.msra.mxu1 %v652_v21 }
 0x4ab   : > { %793 = vmatpush.msra.mxu3 %v748_v31  ;;  %774 = vmatpush.msra.mxu2 %v731_v20 }
 0x4ac   : > { %699 = vmatpush.msra.mxu0 %v649_v24  ;;  %719 = vmatpush.msra.mxu1 %v650_v25 }
 0x4ad   : > { %794 = vmatpush.msra.mxu3 %v747_v32  ;;  %775 = vmatpush.msra.mxu2 %v730_v33 }
 0x4ae   : > { %700 = vmatpush.msra.mxu0 %v647_v28  ;;  %720 = vmatpush.msra.mxu1 %v648_v29 }
 0x4af   : > { %701 = vmatmul.f32.vlgmr.msra.gmra.mxu0 %v1314_v40  ;;  %721 = vmatmul.f32.vlgmr.msra.gmra.mxu1 %v1314_v40  ;;  %v743_v40 = vld [vmem:[#allocation9 + $0x80] sm:$0xff] }
 0x4b0   : > { %776 = vmatpush.msra.mxu2 %v729_v34  ;;  %795 = vmatpush.msra.mxu3 %v746_v35 }
 0x4b1   : > { %1024 = vset.pattern.permute.xlu0 %v1159_v58 }
 0x4b2   : > { %777 = vmatpush.msra.mxu2 %v728_v36  ;;  %796 = vmatpush.msra.mxu3 %v745_v37 }
 0x4b4   : > { %778 = vmatpush.msra.mxu2 %v727_v38  ;;  %797 = vmatpush.msra.mxu3 %v744_v39 }
 0x4b6   : > { %798 = vmatpush.msra.mxu3 %v743_v40 }
 0x52c   : > { %v702_v44 = vpop.f32.mrf.mxu0  ;;  %v722_v45 = vpop.f32.mrf.mxu1 }
 0x52d   : > { %v703_v46 = vadd.f32 %v702_v44, %v681_v42  ;;  %v723_v47 = vadd.f32 %v722_v45, %v682_v43 }
 0x52f   : > { %v725_v48 = vmax.f32 %v703_v46, 0.0  ;;  %v726_v49 = vmax.f32 %v723_v47, 0.0 }
 0x531   : > { %779 = vmatmul.f32.vlgmr.msra.gmra.mxu2 %v725_v48  ;;  %799 = vmatmul.f32.vlgmr.msra.gmra.mxu3 %v726_v49 }
 0x5b4   : > { %v780_v53 = vpop.f32.mrf.mxu2  ;;  %v800_v54 = vpop.f32.mrf.mxu3 }
 0x5b5   : > { %v781_v55 = vadd.f32 %v1025_v52, %v780_v53 }
 0x5b7   : > { %v801_v56 = vadd.f32 %v800_v54, %v781_v55 }
 0x5b9   : > { %v808_v57 = vsel %vm807_vm7, %v801_v56, 0.0 }
 0x5ba   : > { %809 = vadd.xlane.f32.xlu0 %v808_v57 }
 0x62d   : > { %v810_v59 = vpop.xlane.xlu0 %809 }
 0x62e   : > { %v811_v60 = vmul.f32 0.25, %v810_v59 }
 0x630   : > { %v812_v61 = vsub.f32 %v801_v56, %v811_v60 }
 0x632   : > { %815 = vperm.xlu0 %1024, %v812_v61  }
 0x6a4   : > { %v816_v62 = vpop.permute.xlu0 %815 }
 0x6a5   : > { %v818_v63 = vadd.f32 %v816_v62, %v801_v56 }
 0x6a7   : > { %819 = vst [vmem:[%s1346_s8] sm:$0xff] %v818_v63 }
 0x6a8 PF: > { %s20_s29 = sadd.s32 1, %s1146_s29   ;;  %s1350_s27 = smov %s1142_s28 }
 0x6a9   : > { %p17_p0 = scmp.ge.s32.totalorder %s20_s29, 4   ;;  %s1351_s28 = smov %s1353_s17 }
 0x6ab   :  { %19 = sbr.rel (!%p17_p0) target bundleno = 3 (0x3), region = 106 }
 0x6b0   :  { %839 = vsyncpa [#allocation6], 1 }
 0x6b1   :  { %841 = vsyncpa [#allocation6 + $0x1], 1 }
 0x6b2   :  { %842 = vsyncpa [#allocation8], 1 }

</bundles_post_ra>
